<compile_context>
chip_gen: v7x
topology: tpu7x:2x2x1
jax: 0.10.0
libtpu: 0.0.40
codegen_flags: <defaults>
</compile_context>

<pallas_src>
import jax
import jax.numpy as jnp
from jax.experimental import pallas as pl
from jax.experimental.pallas import tpu as pltpu


def _round_up(v, m):
    return ((v + m - 1) // m) * m


def _make_fused_kernel(pieces, n_hid, d_hid_pad, compute_dtype):
    """Fused forward kernel.

    Ref layout: (x, w_in, b_in, [w_h_j, b_h_j]*n_hid, w_out, b_out, o_ref).
    Each weight is pre-packed to (d_prev_pad, k * d_next_pad) with every
    piece 128-lane aligned; each bias is (1, k * d_next_pad), f32.
    """

    def linear(h, w_ref, b_ref):
        # bf16/f32 MXU inputs, f32 accumulation, f32 bias add.
        y = jnp.dot(h.astype(compute_dtype), w_ref[...],
                    preferred_element_type=jnp.float32)
        return y + b_ref[...]

    def maxout(h, w_ref, b_ref):
        # One packed matmul for all k pieces, then a register-resident max
        # over 128-aligned static slices (no relayout).
        y = linear(h, w_ref, b_ref)                      # (bm, k * d_hid_pad)
        m = y[:, :d_hid_pad]
        for i in range(1, pieces):
            m = jnp.maximum(m, y[:, i * d_hid_pad:(i + 1) * d_hid_pad])
        return m

    def kernel(x_ref, *refs):
        o_ref = refs[-1]
        w_in_ref, b_in_ref = refs[0], refs[1]
        hid_refs = refs[2:2 + 2 * n_hid]
        w_out_ref, b_out_ref = refs[-3], refs[-2]

        h = maxout(x_ref[...], w_in_ref, b_in_ref)            # input maxout
        for j in range(n_hid):                                # hidden maxouts
            h = maxout(h, hid_refs[2 * j], hid_refs[2 * j + 1])
        # Output linear (k=1). Single lane-dense store.
        o_ref[...] = linear(h, w_out_ref, b_out_ref).astype(o_ref.dtype)

    return kernel


def _pack_layer(w, b, d_prev_pad, d_next_pad, compute_dtype):
    """(k, d_prev, d_next) weights -> (d_prev_pad, k*d_next_pad), pieces
    zero-padded to 128-lane boundaries; bias -> (1, k*d_next_pad) f32."""
    k, d_prev, d_next = w.shape
    w = jnp.pad(w, ((0, 0), (0, d_prev_pad - d_prev), (0, d_next_pad - d_next)))
    b = jnp.pad(b, ((0, 0), (0, 0), (0, d_next_pad - d_next)))
    w_packed = jnp.transpose(w, (1, 0, 2)).reshape(d_prev_pad, k * d_next_pad)
    b_packed = b.reshape(1, k * d_next_pad)
    return w_packed.astype(compute_dtype), b_packed.astype(jnp.float32)


def maxout_with_dropout_forward(params, x, *, batch_block=256, mxu_dtype=None):
    """Full fused forward pass: one pallas_call for the whole network."""
    w_in, b_in = params["l_in"]          # (k, d_in, d_hid), (k, 1, d_hid)
    hid = params["l_hids"]               # list of ((k, d_hid, d_hid), (k, 1, d_hid))
    w_out, b_out = params["l_out"]       # (1, d_hid, d_out), (1, 1, d_out)
    k, d_in, d_hid = w_in.shape
    d_out = w_out.shape[-1]
    n_hid = len(hid)
    B = x.shape[0]

    # Lane-dense padded widths (multiples of 128); no-op at production widths.
    d_in_p = _round_up(d_in, 128)
    d_hid_p = _round_up(d_hid, 128)
    d_out_p = _round_up(d_out, 128)

    # bf16 MXU inputs (f32 accumulation) only at realistic widths; keep f32
    # at toy widths so the f32 reference comparison holds at 1e-5.
    if mxu_dtype is None:
        mxu_dtype = jnp.bfloat16 if max(d_in_p, d_hid_p) >= 512 else jnp.float32

    # Batch tiling: keep the tile, let Pallas handle a partial last block.
    # NOTE: each packed jnp.dot pushes a full RHS through the MXU; amortize
    # it over >=128 (v5e) / >=256 (v6e, v7x) LHS rows when B allows -- below
    # that the systolic array is mostly draining.  bm never exceeds B.
    bm = min(batch_block, B)
    grid = (pl.cdiv(B, bm),)

    x_p = jnp.pad(x, ((0, 0), (0, d_in_p - d_in)))

    def _resident(arr):
        # Constant block index across the grid -> single-buffer it.
        return pl.BlockSpec(arr.shape, lambda i: (0,) * arr.ndim,
                            pipeline_mode=pl.Buffered(1))

    layers = [(w_in, b_in, d_in_p, d_hid_p)]
    layers += [(w, b, d_hid_p, d_hid_p) for (w, b) in hid]
    layers += [(w_out, b_out, d_hid_p, d_out_p)]

    flat_args = [x_p]
    in_specs = [pl.BlockSpec((bm, d_in_p), lambda i: (i, 0))]
    flops = 0
    for (w, b, dp, dn) in layers:
        wp, bp = _pack_layer(w, b, dp, dn, mxu_dtype)
        flat_args += [wp, bp]
        in_specs += [_resident(wp), _resident(bp)]
        flops += 2 * B * int(wp.shape[0]) * int(wp.shape[1])

    # TODO(synk): at production d_hid (>=2K) a full layer's packed weight no
    # longer fits v7x's 64 MiB VMEM even single-buffered; tile the
    # contraction/output dims per layer (pltpu.emit_pipeline over weight
    # slabs kept in pl.ANY/HBM) so a double-buffered weight tile stays in
    # the ~16-24 MiB range.

    itemsize_x = x.dtype.itemsize
    param_bytes = sum(int(a.size) * a.dtype.itemsize for a in flat_args[1:])
    io_bytes = 2 * bm * (d_in_p + d_out_p) * itemsize_x      # double-buffered x/out blocks
    live_bytes = 4 * bm * max(k * d_hid_p, d_out_p) * 4      # headroom for live f32 activations
    vmem_limit = int(min(max(2 * (param_bytes + io_bytes + live_bytes),
                             32 * 1024 * 1024),
                         128 * 1024 * 1024))

    bytes_accessed = (int(x_p.size) * x_p.dtype.itemsize
                      + param_bytes
                      + B * d_out_p * itemsize_x)

    out = pl.pallas_call(
        _make_fused_kernel(k, n_hid, d_hid_p, mxu_dtype),
        out_shape=jax.ShapeDtypeStruct((B, d_out_p), x.dtype),
        grid_spec=pltpu.PrefetchScalarGridSpec(
            num_scalar_prefetch=0,
            grid=grid,
            in_specs=in_specs,
            out_specs=pl.BlockSpec((bm, d_out_p), lambda i: (i, 0)),
        ),
        compiler_params=pltpu.CompilerParams(
            dimension_semantics=("parallel",),
            vmem_limit_bytes=vmem_limit,
        ),
        cost_estimate=pl.CostEstimate(
            flops=int(flops), transcendentals=0,
            bytes_accessed=int(bytes_accessed)),
    )(*flat_args)

    # Strip lane padding (no-op when d_out is already a 128-multiple).
    return out[:, :d_out]


def _init_piece(key, k, d_in, d_out, dtype=jnp.float32):
    """PyTorch-like Linear init: U(-1/sqrt(fan_in), 1/sqrt(fan_in))."""
    kw, kb = jax.random.split(key)
    bound = 1.0 / jnp.sqrt(jnp.array(d_in, dtype))
    w = jax.random.uniform(kw, (k, d_in, d_out), dtype, -bound, bound)
    b = jax.random.uniform(kb, (k, 1, d_out), dtype, -bound, bound)
    return w, b


def make_params(key, d_in, d_hid, d_out, k, n_layer, dtype=jnp.float32):
    keys = jax.random.split(key, n_layer + 1)
    return {
        "l_in": _init_piece(keys[0], k, d_in, d_hid, dtype),
        "l_hids": [_init_piece(keys[1 + j], k, d_hid, d_hid, dtype)
                   for j in range(n_layer - 1)],
        "l_out": _init_piece(keys[n_layer], 1, d_hid, d_out, dtype),
    }


def reference_forward(params, x):
    """Plain-JAX reference mirroring the PyTorch module (eval mode)."""
    def mo(h, w, b):
        y = jnp.einsum("bi,kio->kbo", h, w) + b     # (k, B, d)
        return jnp.max(y, axis=0)
    h = mo(x, *params["l_in"])
    for (w, b) in params["l_hids"]:
        h = mo(h, w, b)
    w, b = params["l_out"]
    return h @ w[0] + b[0]


if __name__ == "__main__":
    # Small, module-consistent shapes. (Benchmark at realistic B / d_hid with
    # xprof minima -- at this size the kernel is pure launch/DMA overhead.)
    batch, d_in, d_hid, d_out, k, n_layer = 8, 32, 32, 8, 3, 3

    key = jax.random.PRNGKey(0)
    k_params, k_x = jax.random.split(key)
    params = make_params(k_params, d_in, d_hid, d_out, k, n_layer)
    x = jax.random.normal(k_x, (batch, d_in), jnp.float32)

    out = maxout_with_dropout_forward(params, x)
    out = jax.block_until_ready(out)

    ref = reference_forward(params, x)
    assert out.shape == (batch, d_out), out.shape
    max_err = float(jnp.max(jnp.abs(out - ref)))
    assert jnp.allclose(out, ref, atol=1e-5, rtol=1e-5), max_err

    print("KERNEL_OK")
</pallas_src>

<mosaic_0001>
module attributes {stable_mosaic.version = 11 : i64} {
  func.func @kernel(%arg0: i32, %arg1: memref<8x128xf32, #tpu.memory_space<vmem>>, %arg2: memref<128x384xf32, #tpu.memory_space<vmem>>, %arg3: memref<1x384xf32, #tpu.memory_space<vmem>>, %arg4: memref<128x384xf32, #tpu.memory_space<vmem>>, %arg5: memref<1x384xf32, #tpu.memory_space<vmem>>, %arg6: memref<128x384xf32, #tpu.memory_space<vmem>>, %arg7: memref<1x384xf32, #tpu.memory_space<vmem>>, %arg8: memref<128x128xf32, #tpu.memory_space<vmem>>, %arg9: memref<1x128xf32, #tpu.memory_space<vmem>>, %arg10: memref<8x128xf32, #tpu.memory_space<vmem>>) attributes {dimension_semantics = [#tpu.dimension_semantics<parallel>], iteration_bounds = array<i64: 1>, scalar_prefetch = 0 : i64, scratch_operands = 0 : i64, tpu.core_type = #tpu.core_type<tc>, window_params = [{transform_indices = @transform_0, window_bounds = array<i64: 8, 128>}, {pipeline_mode = #tpu.pipeline_mode<synchronous>, transform_indices = @transform_1, window_bounds = array<i64: 128, 384>}, {pipeline_mode = #tpu.pipeline_mode<synchronous>, transform_indices = @transform_2, window_bounds = array<i64: 1, 384>}, {pipeline_mode = #tpu.pipeline_mode<synchronous>, transform_indices = @transform_3, window_bounds = array<i64: 128, 384>}, {pipeline_mode = #tpu.pipeline_mode<synchronous>, transform_indices = @transform_4, window_bounds = array<i64: 1, 384>}, {pipeline_mode = #tpu.pipeline_mode<synchronous>, transform_indices = @transform_5, window_bounds = array<i64: 128, 384>}, {pipeline_mode = #tpu.pipeline_mode<synchronous>, transform_indices = @transform_6, window_bounds = array<i64: 1, 384>}, {pipeline_mode = #tpu.pipeline_mode<synchronous>, transform_indices = @transform_7, window_bounds = array<i64: 128, 128>}, {pipeline_mode = #tpu.pipeline_mode<synchronous>, transform_indices = @transform_8, window_bounds = array<i64: 1, 128>}, {transform_indices = @transform_9, window_bounds = array<i64: 8, 128>}]} {
    %c0 = arith.constant 0 : index
    %c0_0 = arith.constant 0 : index
    %0 = vector.load %arg1[%c0, %c0_0] : memref<8x128xf32, #tpu.memory_space<vmem>>, vector<8x128xf32>
    %c0_1 = arith.constant 0 : index
    %c0_2 = arith.constant 0 : index
    %1 = vector.load %arg2[%c0_1, %c0_2] : memref<128x384xf32, #tpu.memory_space<vmem>>, vector<128x384xf32>
    %cst = arith.constant dense<0.000000e+00> : vector<8x384xf32>
    %2 = tpu.matmul %0, %1, %cst {dimension_numbers = #tpu.dot_dimension_numbers<[1], [0], [0], [1], [0, 0, 1, 1], [], []>} : vector<8x128xf32>, vector<128x384xf32>, vector<8x384xf32> -> vector<8x384xf32>
    %c0_3 = arith.constant 0 : index
    %c0_4 = arith.constant 0 : index
    %3 = vector.load %arg3[%c0_3, %c0_4] : memref<1x384xf32, #tpu.memory_space<vmem>>, vector<1x384xf32>
    %4 = vector.broadcast %3 : vector<1x384xf32> to vector<8x384xf32>
    %5 = arith.addf %2, %4 : vector<8x384xf32>
    %6 = vector.extract_strided_slice %5 {offsets = [0, 0], sizes = [8, 128], strides = [1, 1]} : vector<8x384xf32> to vector<8x128xf32>
    %7 = vector.extract_strided_slice %5 {offsets = [0, 128], sizes = [8, 128], strides = [1, 1]} : vector<8x384xf32> to vector<8x128xf32>
    %8 = arith.maximumf %6, %7 : vector<8x128xf32>
    %9 = vector.extract_strided_slice %5 {offsets = [0, 256], sizes = [8, 128], strides = [1, 1]} : vector<8x384xf32> to vector<8x128xf32>
    %10 = arith.maximumf %8, %9 : vector<8x128xf32>
    %c0_5 = arith.constant 0 : index
    %c0_6 = arith.constant 0 : index
    %11 = vector.load %arg4[%c0_5, %c0_6] : memref<128x384xf32, #tpu.memory_space<vmem>>, vector<128x384xf32>
    %cst_7 = arith.constant dense<0.000000e+00> : vector<8x384xf32>
    %12 = tpu.matmul %10, %11, %cst_7 {dimension_numbers = #tpu.dot_dimension_numbers<[1], [0], [0], [1], [0, 0, 1, 1], [], []>} : vector<8x128xf32>, vector<128x384xf32>, vector<8x384xf32> -> vector<8x384xf32>
    %c0_8 = arith.constant 0 : index
    %c0_9 = arith.constant 0 : index
    %13 = vector.load %arg5[%c0_8, %c0_9] : memref<1x384xf32, #tpu.memory_space<vmem>>, vector<1x384xf32>
    %14 = vector.broadcast %13 : vector<1x384xf32> to vector<8x384xf32>
    %15 = arith.addf %12, %14 : vector<8x384xf32>
    %16 = vector.extract_strided_slice %15 {offsets = [0, 0], sizes = [8, 128], strides = [1, 1]} : vector<8x384xf32> to vector<8x128xf32>
    %17 = vector.extract_strided_slice %15 {offsets = [0, 128], sizes = [8, 128], strides = [1, 1]} : vector<8x384xf32> to vector<8x128xf32>
    %18 = arith.maximumf %16, %17 : vector<8x128xf32>
    %19 = vector.extract_strided_slice %15 {offsets = [0, 256], sizes = [8, 128], strides = [1, 1]} : vector<8x384xf32> to vector<8x128xf32>
    %20 = arith.maximumf %18, %19 : vector<8x128xf32>
    %c0_10 = arith.constant 0 : index
    %c0_11 = arith.constant 0 : index
    %21 = vector.load %arg6[%c0_10, %c0_11] : memref<128x384xf32, #tpu.memory_space<vmem>>, vector<128x384xf32>
    %cst_12 = arith.constant dense<0.000000e+00> : vector<8x384xf32>
    %22 = tpu.matmul %20, %21, %cst_12 {dimension_numbers = #tpu.dot_dimension_numbers<[1], [0], [0], [1], [0, 0, 1, 1], [], []>} : vector<8x128xf32>, vector<128x384xf32>, vector<8x384xf32> -> vector<8x384xf32>
    %c0_13 = arith.constant 0 : index
    %c0_14 = arith.constant 0 : index
    %23 = vector.load %arg7[%c0_13, %c0_14] : memref<1x384xf32, #tpu.memory_space<vmem>>, vector<1x384xf32>
    %24 = vector.broadcast %23 : vector<1x384xf32> to vector<8x384xf32>
    %25 = arith.addf %22, %24 : vector<8x384xf32>
    %26 = vector.extract_strided_slice %25 {offsets = [0, 0], sizes = [8, 128], strides = [1, 1]} : vector<8x384xf32> to vector<8x128xf32>
    %27 = vector.extract_strided_slice %25 {offsets = [0, 128], sizes = [8, 128], strides = [1, 1]} : vector<8x384xf32> to vector<8x128xf32>
    %28 = arith.maximumf %26, %27 : vector<8x128xf32>
    %29 = vector.extract_strided_slice %25 {offsets = [0, 256], sizes = [8, 128], strides = [1, 1]} : vector<8x384xf32> to vector<8x128xf32>
    %30 = arith.maximumf %28, %29 : vector<8x128xf32>
    %c0_15 = arith.constant 0 : index
    %c0_16 = arith.constant 0 : index
    %31 = vector.load %arg8[%c0_15, %c0_16] : memref<128x128xf32, #tpu.memory_space<vmem>>, vector<128x128xf32>
    %cst_17 = arith.constant dense<0.000000e+00> : vector<8x128xf32>
    %32 = tpu.matmul %30, %31, %cst_17 {dimension_numbers = #tpu.dot_dimension_numbers<[1], [0], [0], [1], [0, 0, 1, 1], [], []>} : vector<8x128xf32>, vector<128x128xf32>, vector<8x128xf32> -> vector<8x128xf32>
    %c0_18 = arith.constant 0 : index
    %c0_19 = arith.constant 0 : index
    %33 = vector.load %arg9[%c0_18, %c0_19] : memref<1x128xf32, #tpu.memory_space<vmem>>, vector<1x128xf32>
    %34 = vector.broadcast %33 : vector<1x128xf32> to vector<8x128xf32>
    %35 = arith.addf %32, %34 : vector<8x128xf32>
    %c0_20 = arith.constant 0 : index
    %c0_21 = arith.constant 0 : index
    %36 = vector.load %arg10[%c0_20, %c0_21] : memref<8x128xf32, #tpu.memory_space<vmem>>, vector<8x128xf32>
    tpu.vector_store %arg10[%c0_20, %c0_21], %35 {strides = array<i32>} : memref<8x128xf32, #tpu.memory_space<vmem>>, vector<8x128xf32>,
    return
  }
  func.func @transform_0(%arg0: i32) -> (i32, i32) {
    %c0_i32 = arith.constant 0 : i32
    %c0_i32_0 = arith.constant 0 : i32
    return %arg0, %c0_i32 : i32, i32
  }
  func.func @transform_1(%arg0: i32) -> (i32, i32) {
    %c0_i32 = arith.constant 0 : i32
    %c0_i32_0 = arith.constant 0 : i32
    %c0_i32_1 = arith.constant 0 : i32
    return %c0_i32, %c0_i32_0 : i32, i32
  }
  func.func @transform_2(%arg0: i32) -> (i32, i32) {
    %c0_i32 = arith.constant 0 : i32
    %c0_i32_0 = arith.constant 0 : i32
    %c0_i32_1 = arith.constant 0 : i32
    return %c0_i32, %c0_i32_0 : i32, i32
  }
  func.func @transform_3(%arg0: i32) -> (i32, i32) {
    %c0_i32 = arith.constant 0 : i32
    %c0_i32_0 = arith.constant 0 : i32
    %c0_i32_1 = arith.constant 0 : i32
    return %c0_i32, %c0_i32_0 : i32, i32
  }
  func.func @transform_4(%arg0: i32) -> (i32, i32) {
    %c0_i32 = arith.constant 0 : i32
    %c0_i32_0 = arith.constant 0 : i32
    %c0_i32_1 = arith.constant 0 : i32
    return %c0_i32, %c0_i32_0 : i32, i32
  }
  func.func @transform_5(%arg0: i32) -> (i32, i32) {
    %c0_i32 = arith.constant 0 : i32
    %c0_i32_0 = arith.constant 0 : i32
    %c0_i32_1 = arith.constant 0 : i32
    return %c0_i32, %c0_i32_0 : i32, i32
  }
  func.func @transform_6(%arg0: i32) -> (i32, i32) {
    %c0_i32 = arith.constant 0 : i32
    %c0_i32_0 = arith.constant 0 : i32
    %c0_i32_1 = arith.constant 0 : i32
    return %c0_i32, %c0_i32_0 : i32, i32
  }
  func.func @transform_7(%arg0: i32) -> (i32, i32) {
    %c0_i32 = arith.constant 0 : i32
    %c0_i32_0 = arith.constant 0 : i32
    %c0_i32_1 = arith.constant 0 : i32
    return %c0_i32, %c0_i32_0 : i32, i32
  }
  func.func @transform_8(%arg0: i32) -> (i32, i32) {
    %c0_i32 = arith.constant 0 : i32
    %c0_i32_0 = arith.constant 0 : i32
    %c0_i32_1 = arith.constant 0 : i32
    return %c0_i32, %c0_i32_0 : i32, i32
  }
  func.func @transform_9(%arg0: i32) -> (i32, i32) {
    %c0_i32 = arith.constant 0 : i32
    %c0_i32_0 = arith.constant 0 : i32
    return %arg0, %c0_i32 : i32, i32
  }
}

</mosaic_0001>

<bundles_post_ra>
// kernel: tpu_custom_call.1
= control target key start
LH: loop header
LB: loop body
LE: loop exit
PB: predicated region body
PF: predicated region fallthrough
CT: control target
= control target key end

     0   :  { %14 = vsyncpa [#allocation3], 0  ;;  %s1603_s0 = inlined_call_operand.hbm [shape: f32[8,128], index: 0, kind: input, shape index: {}]   ;;  %s1604_s1 = inlined_call_operand.hbm [shape: f32[128,384], index: 1, kind: input, shape index: {}]   ;;  %s1605_s2 = inlined_call_operand.vmem [shape: f32[1,384], index: 2, kind: input, shape index: {}]   ;;  %s1606_s3 = inlined_call_operand.hbm [shape: f32[128,384], index: 3, kind: input, shape index: {}]   ;;  %s1607_s4 = inlined_call_operand.vmem [shape: f32[1,384], index: 4, kind: input, shape index: {}]   ;;  %s1608_s5 = inlined_call_operand.hbm [shape: f32[128,384], index: 5, kind: input, shape index: {}]   ;;  %s1609_s6 = inlined_call_operand.vmem [shape: f32[1,384], index: 6, kind: input, shape index: {}]   ;;  %s1610_s7 = inlined_call_operand.hbm [shape: f32[128,128], index: 7, kind: input, shape index: {}]   ;;  %s1611_s8 = inlined_call_operand.vmem [shape: f32[1,128], index: 8, kind: input, shape index: {}]   ;;  %s1612_s9 = inlined_call_operand.hbm [shape: f32[8,128], index: 9, kind: output, shape index: {}]  }
   0x1   :  { %15 = vsyncpa [#allocation6], 0 }
   0x2   :  { %16 = vsyncpa [#allocation9], 0 }
   0x3   :  { %17 = vsyncpa [#allocation4], 0  ;;  %s1389_s30 = smov [#allocation5]   ;;  %s1249_s13 = scalar_lea.hbm %s1604_s1, 6144 }
   0x4   :  { %s33_s10 = sshll.u32 %s1389_s30, 4  ;;  %p1250_p0 = scmp.ne.s32.totalorder %s1604_s1, %s1249_s13  ;;  %s34_s10 = int_to_ptr.vmem [resolvable:$true] %s33_s10 }
   0x5   :  { %p1253_p1 = scmp.lt.u32.totalorder %s1249_s13, %s1604_s1 }
   0x7   :  { %p1255_p2 = pnand %p1253_p1, %p1250_p0 }
   0x9   :  { %1258 = shalt.err (!%p1255_p2)
}
   0xa   :  { %s1259_s18 = scalar_lea.vmem %s34_s10, 6144  ;;  %p1264_p4 = scmp.lt.s32.totalorder %s34_s10, %s34_s10 }
   0xb   :  { %p1260_p3 = scmp.ne.s32.totalorder %s34_s10, %s1259_s18  ;;  %p1265_p5 = scmp.lt.s32.totalorder %s1259_s18, %s1259_s18 }
   0xd   :  { %p1266_p6 = por %p1265_p5, %p1264_p4 }
   0xf   :  { %p1267_p7 = pnand %p1266_p6, %p1260_p3 }
  0x11   :  { %1270 = shalt.err (!%p1267_p7)
}
  0x12   :  { %s1390_s19 = smov 384   ;;  %s1391_s20 = smov 24  }
  0x13   :  { %39 = dma.hbm_to_vmem [thread:$0]  %s1604_s1, 6144, %s34_s10, [#allocation6], %s1390_s19, %s1390_s19, %s1391_s20  }
  0x14   :  { %s1392_s23 = smov [#allocation8]   ;;  %s1393_s25 = smov [#allocation2]  }
  0x15   :  { %s61_s24 = sshll.u32 %s1392_s23, 4  ;;  %s24_s26 = sshll.u32 %s1393_s25, 4  ;;  %s62_s24 = int_to_ptr.vmem [resolvable:$true] %s61_s24  ;;  %s25_s26 = int_to_ptr.vmem [resolvable:$true] %s24_s26 }
  0x16   :  { %s1271_s29 = scalar_lea.hbm %s1608_s5, 6144 }
  0x17   :  { %p1272_p8 = scmp.ne.s32.totalorder %s1608_s5, %s1271_s29  ;;  %p1275_p9 = scmp.lt.u32.totalorder %s1271_s29, %s1608_s5 }
  0x19   :  { %p1277_p10 = pnand %p1275_p9, %p1272_p8 }
  0x1b   :  { %1280 = shalt.err (!%p1277_p10)
}
  0x1c   :  { %s1281_s1 = scalar_lea.vmem %s62_s24, 6144  ;;  %p1286_p12 = scmp.lt.s32.totalorder %s62_s24, %s62_s24 }
  0x1d   :  { %p1282_p11 = scmp.ne.s32.totalorder %s62_s24, %s1281_s1  ;;  %p1287_p13 = scmp.lt.s32.totalorder %s1281_s1, %s1281_s1 }
  0x1f   :  { %p1288_p0 = por %p1287_p13, %p1286_p12 }
  0x21   :  { %p1289_p1 = pnand %p1288_p0, %p1282_p11 }
  0x23   :  { %1292 = shalt.err (!%p1289_p1)
}
  0x24   :  { %67 = dma.hbm_to_vmem [thread:$0]  %s1608_s5, 6144, %s62_s24, [#allocation9], %s1390_s19, %s1390_s19, %s1391_s20  }
  0x25   :  { %s1293_s17 = scalar_lea.hbm %s1603_s0, 128 }
  0x26   :  { %p1294_p2 = scmp.ne.s32.totalorder %s1603_s0, %s1293_s17  ;;  %p1297_p3 = scmp.lt.u32.totalorder %s1293_s17, %s1603_s0 }
  0x28   :  { %p1299_p4 = pnand %p1297_p3, %p1294_p2 }
  0x2a   :  { %1302 = shalt.err (!%p1299_p4)
}
  0x2b   :  { %s1303_s25 = scalar_lea.vmem %s25_s26, 128  ;;  %p1308_p6 = scmp.lt.s32.totalorder %s25_s26, %s25_s26 }
  0x2c   :  { %p1304_p5 = scmp.ne.s32.totalorder %s25_s26, %s1303_s25  ;;  %p1309_p7 = scmp.lt.s32.totalorder %s1303_s25, %s1303_s25 }
  0x2e   :  { %p1310_p8 = por %p1309_p7, %p1308_p6 }
  0x30   :  { %p1311_p9 = pnand %p1310_p8, %p1304_p5 }
  0x32   :  { %1314 = shalt.err (!%p1311_p9)
}
  0x33   :  { %27 = dma.hbm_to_vmem [thread:$0]  %s1603_s0, 128, %s25_s26, [#allocation3]  }
  0x34   :  { %s1394_s27 = smov [#allocation7]   ;;  %s1395_s29 = smov [#allocation10]  }
  0x35   :  { %s47_s28 = sshll.u32 %s1394_s27, 4  ;;  %s75_s30 = sshll.u32 %s1395_s29, 4  ;;  %s48_s28 = int_to_ptr.vmem [resolvable:$true] %s47_s28  ;;  %s76_s30 = int_to_ptr.vmem [resolvable:$true] %s75_s30 }
  0x36   :  { %s1315_s13 = scalar_lea.hbm %s1606_s3, 6144 }
  0x37   :  { %p1316_p10 = scmp.ne.s32.totalorder %s1606_s3, %s1315_s13  ;;  %p1319_p11 = scmp.lt.u32.totalorder %s1315_s13, %s1606_s3 }
  0x39   :  { %p1321_p12 = pnand %p1319_p11, %p1316_p10 }
  0x3b   :  { %1324 = shalt.err (!%p1321_p12)
}
  0x3c   :  { %s1325_s0 = scalar_lea.vmem %s48_s28, 6144  ;;  %p1330_p0 = scmp.lt.s32.totalorder %s48_s28, %s48_s28 }
  0x3d   :  { %p1326_p13 = scmp.ne.s32.totalorder %s48_s28, %s1325_s0  ;;  %p1331_p1 = scmp.lt.s32.totalorder %s1325_s0, %s1325_s0 }
  0x3f   :  { %p1332_p2 = por %p1331_p1, %p1330_p0 }
  0x41   :  { %p1333_p3 = pnand %p1332_p2, %p1326_p13 }
  0x43   :  { %1336 = shalt.err (!%p1333_p3)
}
  0x44   :  { %53 = dma.hbm_to_vmem [thread:$0]  %s1606_s3, 6144, %s48_s28, [#allocation6], %s1390_s19, %s1390_s19, %s1391_s20  }
  0x45   :  { %s1337_s21 = scalar_lea.hbm %s1610_s7, 2048 }
  0x46   :  { %p1338_p4 = scmp.ne.s32.totalorder %s1610_s7, %s1337_s21  ;;  %p1341_p5 = scmp.lt.u32.totalorder %s1337_s21, %s1610_s7 }
  0x48   :  { %p1343_p6 = pnand %p1341_p5, %p1338_p4 }
  0x4a   :  { %1346 = shalt.err (!%p1343_p6)
}
  0x4b   :  { %s1347_s24 = scalar_lea.vmem %s76_s30, 2048  ;;  %p1352_p8 = scmp.lt.s32.totalorder %s76_s30, %s76_s30 }
  0x4c   :  { %p1348_p7 = scmp.ne.s32.totalorder %s76_s30, %s1347_s24  ;;  %p1353_p9 = scmp.lt.s32.totalorder %s1347_s24, %s1347_s24 }
  0x4e   :  { %p1354_p10 = por %p1353_p9, %p1352_p8 }
  0x50   :  { %p1355_p11 = pnand %p1354_p10, %p1348_p7 }
  0x52   :  { %1358 = shalt.err (!%p1355_p11)
}
  0x53   :  { %s1396_s3 = smov 128   ;;  %s1397_s19 = smov 8  }
  0x54   :  { %81 = dma.hbm_to_vmem [thread:$0]  %s1610_s7, 2048, %s76_s30, [#allocation9], %s1396_s3, %s1396_s3, %s1397_s19  }
  0x55   :  { %1381 = dma.done.wait [#allocation3], 128  }
  0x56   :  { %1382 = vsyncadd [#allocation3], 4294967168 }
  0x57   :  { %1383 = dma.done.wait [#allocation6], 12288  }
  0x58   :  { %1384 = vsyncadd [#allocation6], 4294955008 }
  0x59   :  { %1385 = dma.done.wait [#allocation9], 8192  }
  0x5a   :  { %1386 = vsyncadd [#allocation9], 4294959104  ;;  %v1398_v0 = vmov 0.0|0.0   ;;  %v1399_v1 = vmov 0.0   ;;  %vm1400_vm0 = vmmov 0   ;;  %v101_v2 = vld [vmem:[#allocation5 + $0x8] sm:$0xff] }
  0x5b   :  { %1076 = vmatprep.subr.bf16.mxu1 %v1398_v0  ;;  %229 = vmatprep.mubr.f32.mxu0 %v1399_v1  ;;  %v104_v3 = vld [vmem:[#allocation5 + $0x20] sm:$0xff]  ;;  %v103_v6 = vld [vmem:[#allocation5 + $0x18] sm:$0xff]  ;;  %v102_v7 = vld [vmem:[#allocation5 + $0x10] sm:$0xff] }
  0x5c   :  { %936 = vmatprep.mubr.msk.f32.mxu1 %vm1400_vm0, %v1399_v1  ;;  %v100_v4 = vld [vmem:[#allocation5] sm:$0xff]  ;;  %v1044_v5 = vpack.c.bf16 %v104_v3, %v101_v2  ;;  %v105_v8 = vld [vmem:[#allocation5 + $0x28] sm:$0xff]  ;;  %v107_v11 = vld [vmem:[#allocation5 + $0x38] sm:$0xff] }
  0x5d   :  { %v1046_v9 = vpack.c.bf16 %v103_v6, %v100_v4  ;;  %v1077_v10 = vpack.c.bf16 %v105_v8, %v102_v7  ;;  %v110_v12 = vld [vmem:[#allocation5 + $0x50] sm:$0xff]  ;;  %v109_v15 = vld [vmem:[#allocation5 + $0x48] sm:$0xff]  ;;  %v108_v16 = vld [vmem:[#allocation5 + $0x40] sm:$0xff] }
  0x5e   :  { %v106_v13 = vld [vmem:[#allocation5 + $0x30] sm:$0xff]  ;;  %1045 = vmatprep.subr.bf16.mxu0 %v1044_v5  ;;  %v1048_v14 = vpack.c.bf16 %v110_v12, %v107_v11  ;;  %v111_v17 = vld [vmem:[#allocation5 + $0x58] sm:$0xff]  ;;  %v113_v20 = vld [vmem:[#allocation5 + $0x68] sm:$0xff] }
  0x5f   :  { %1047 = vmatpush1.bf16.msra.mxu0 %v1046_v9  ;;  %1078 = vmatpush3.bf16.msra.mxu1 %v1077_v10  ;;  %v1050_v18 = vpack.c.bf16 %v109_v15, %v106_v13  ;;  %v1080_v19 = vpack.c.bf16 %v111_v17, %v108_v16  ;;  %v116_v21 = vld [vmem:[#allocation5 + $0x80] sm:$0xff]  ;;  %v115_v24 = vld [vmem:[#allocation5 + $0x78] sm:$0xff]  ;;  %v114_v25 = vld [vmem:[#allocation5 + $0x70] sm:$0xff] }
  0x60   :  { %v112_v22 = vld [vmem:[#allocation5 + $0x60] sm:$0xff]  ;;  %1049 = vmatprep.subr.bf16.mxu0 %v1048_v14  ;;  %1079 = vmatprep.subr.bf16.mxu1 %v1398_v0  ;;  %v1052_v23 = vpack.c.bf16 %v116_v21, %v113_v20  ;;  %v117_v26 = vld [vmem:[#allocation5 + $0x88] sm:$0xff]  ;;  %v119_v27 = vld [vmem:[#allocation5 + $0x98] sm:$0xff] }
  0x61   :  { %v122_v28 = vld [vmem:[#allocation5 + $0xb0] sm:$0xff]  ;;  %v1054_v29 = vpack.c.bf16 %v115_v24, %v112_v22  ;;  %v1083_v30 = vpack.c.bf16 %v117_v26, %v114_v25  ;;  %v121_v33 = vld [vmem:[#allocation5 + $0xa8] sm:$0xff]  ;;  %v120_v34 = vld [vmem:[#allocation5 + $0xa0] sm:$0xff] }
  0x62   :  { %v118_v31 = vld [vmem:[#allocation5 + $0x90] sm:$0xff]  ;;  %v1056_v32 = vpack.c.bf16 %v122_v28, %v119_v27  ;;  %v123_v35 = vld [vmem:[#allocation5 + $0xb8] sm:$0xff]  ;;  %v125_v36 = vld [vmem:[#allocation5 + $0xc8] sm:$0xff] }
  0x63   :  { %1051 = vmatpush1.bf16.msra.mxu0 %v1050_v18  ;;  %1081 = vmatpush3.bf16.msra.mxu1 %v1080_v19  ;;  %v128_v37 = vld [vmem:[#allocation5 + $0xe0] sm:$0xff]  ;;  %v1058_v38 = vpack.c.bf16 %v121_v33, %v118_v31  ;;  %v1086_v39 = vpack.c.bf16 %v123_v35, %v120_v34  ;;  %v127_v42 = vld [vmem:[#allocation5 + $0xd8] sm:$0xff]  ;;  %v126_v43 = vld [vmem:[#allocation5 + $0xd0] sm:$0xff] }
  0x64   :  { %1053 = vmatprep.subr.bf16.mxu0 %v1052_v23  ;;  %1082 = vmatprep.subr.bf16.mxu1 %v1398_v0  ;;  %v124_v40 = vld [vmem:[#allocation5 + $0xc0] sm:$0xff]  ;;  %v1060_v41 = vpack.c.bf16 %v128_v37, %v125_v36  ;;  %v129_v44 = vld [vmem:[#allocation5 + $0xe8] sm:$0xff]  ;;  %v131_v45 = vld [vmem:[#allocation5 + $0xf8] sm:$0xff] }
  0x65   :  { %v134_v46 = vld [vmem:[#allocation5 + $0x110] sm:$0xff]  ;;  %v1062_v47 = vpack.c.bf16 %v127_v42, %v124_v40  ;;  %v1089_v48 = vpack.c.bf16 %v129_v44, %v126_v43  ;;  %v133_v51 = vld [vmem:[#allocation5 + $0x108] sm:$0xff]  ;;  %v132_v52 = vld [vmem:[#allocation5 + $0x100] sm:$0xff] }
  0x66   :  { %v130_v49 = vld [vmem:[#allocation5 + $0xf0] sm:$0xff]  ;;  %v1064_v50 = vpack.c.bf16 %v134_v46, %v131_v45  ;;  %v135_v53 = vld [vmem:[#allocation5 + $0x118] sm:$0xff]  ;;  %v137_v54 = vld [vmem:[#allocation5 + $0x128] sm:$0xff] }
  0x67   :  { %1055 = vmatpush1.bf16.msra.mxu0 %v1054_v29  ;;  %1084 = vmatpush3.bf16.msra.mxu1 %v1083_v30  ;;  %v140_v55 = vld [vmem:[#allocation5 + $0x140] sm:$0xff]  ;;  %v1066_v56 = vpack.c.bf16 %v133_v51, %v130_v49  ;;  %v1092_v57 = vpack.c.bf16 %v135_v53, %v132_v52  ;;  %v139_v60 = vld [vmem:[#allocation5 + $0x138] sm:$0xff]  ;;  %v138_v61 = vld [vmem:[#allocation5 + $0x130] sm:$0xff] }
  0x68   :  { %1057 = vmatprep.subr.bf16.mxu0 %v1056_v32  ;;  %1085 = vmatprep.subr.bf16.mxu1 %v1398_v0  ;;  %v136_v58 = vld [vmem:[#allocation5 + $0x120] sm:$0xff]  ;;  %v1068_v59 = vpack.c.bf16 %v140_v55, %v137_v54  ;;  %v141_v62 = vld [vmem:[#allocation5 + $0x148] sm:$0xff]  ;;  %v143_v63 = vld [vmem:[#allocation5 + $0x158] sm:$0xff] }
  0x69   :  { %v146_v2 = vld [vmem:[#allocation5 + $0x170] sm:$0xff]  ;;  %v1070_v3 = vpack.c.bf16 %v139_v60, %v136_v58  ;;  %v1095_v4 = vpack.c.bf16 %v141_v62, %v138_v61  ;;  %v145_v7 = vld [vmem:[#allocation5 + $0x168] sm:$0xff]  ;;  %v144_v8 = vld [vmem:[#allocation5 + $0x160] sm:$0xff] }
  0x6a   :  { %v142_v5 = vld [vmem:[#allocation5 + $0x150] sm:$0xff]  ;;  %v1072_v6 = vpack.c.bf16 %v146_v2, %v143_v63  ;;  %v147_v9 = vld [vmem:[#allocation5 + $0x178] sm:$0xff]  ;;  %v309_v10 = vld [vmem:[#allocation7 + $0x8] sm:$0xff] }
  0x6b   :  { %1059 = vmatpush1.bf16.msra.mxu0 %v1058_v38  ;;  %1087 = vmatpush3.bf16.msra.mxu1 %v1086_v39  ;;  %v312_v11 = vld [vmem:[#allocation7 + $0x20] sm:$0xff]  ;;  %v1074_v12 = vpack.c.bf16 %v145_v7, %v142_v5  ;;  %v1098_v13 = vpack.c.bf16 %v147_v9, %v144_v8  ;;  %v311_v16 = vld [vmem:[#allocation7 + $0x18] sm:$0xff]  ;;  %v310_v17 = vld [vmem:[#allocation7 + $0x10] sm:$0xff] }
  0x6c   :  { %1061 = vmatprep.subr.bf16.mxu0 %v1060_v41  ;;  %1088 = vmatprep.subr.bf16.mxu1 %v1398_v0  ;;  %v308_v14 = vld [vmem:[#allocation7] sm:$0xff]  ;;  %v1100_v15 = vpack.c.bf16 %v312_v11, %v309_v10  ;;  %v313_v18 = vld [vmem:[#allocation7 + $0x28] sm:$0xff]  ;;  %v315_v19 = vld [vmem:[#allocation7 + $0x38] sm:$0xff] }
  0x6d   :  { %v318_v20 = vld [vmem:[#allocation7 + $0x50] sm:$0xff]  ;;  %v99_v21 = vld [vmem:[#allocation2] sm:$0xff]  ;;  %v1102_v22 = vpack.c.bf16 %v311_v16, %v308_v14  ;;  %v1133_v23 = vpack.c.bf16 %v313_v18, %v310_v17  ;;  %v317_v26 = vld [vmem:[#allocation7 + $0x48] sm:$0xff] }
  0x6e   :  { %v314_v24 = vld [vmem:[#allocation7 + $0x30] sm:$0xff]  ;;  %v1104_v25 = vpack.c.bf16 %v318_v20, %v315_v19  ;;  %v316_v27 = vld [vmem:[#allocation7 + $0x40] sm:$0xff]  ;;  %v319_v28 = vld [vmem:[#allocation7 + $0x58] sm:$0xff] }
  0x6f   :  { %1063 = vmatpush1.bf16.msra.mxu0 %v1062_v47  ;;  %1090 = vmatpush3.bf16.msra.mxu1 %v1089_v48  ;;  %v321_v29 = vld [vmem:[#allocation7 + $0x68] sm:$0xff]  ;;  %v324_v30 = vld [vmem:[#allocation7 + $0x80] sm:$0xff]  ;;  %v1106_v31 = vpack.c.bf16 %v317_v26, %v314_v24  ;;  %v1136_v32 = vpack.c.bf16 %v319_v28, %v316_v27  ;;  %v323_v35 = vld [vmem:[#allocation7 + $0x78] sm:$0xff]  ;;  %v150_v26 = vlaneseq }
  0x70   :  { %1065 = vmatprep.subr.bf16.mxu0 %v1064_v50  ;;  %1091 = vmatprep.subr.bf16.mxu1 %v1398_v0  ;;  %v320_v33 = vld [vmem:[#allocation7 + $0x60] sm:$0xff]  ;;  %v1108_v34 = vpack.c.bf16 %v324_v30, %v321_v29  ;;  %v322_v36 = vld [vmem:[#allocation7 + $0x70] sm:$0xff]  ;;  %v325_v37 = vld [vmem:[#allocation7 + $0x88] sm:$0xff] }
  0x71   :  { %v327_v38 = vld [vmem:[#allocation7 + $0x98] sm:$0xff]  ;;  %v330_v39 = vld [vmem:[#allocation7 + $0xb0] sm:$0xff]  ;;  %v1110_v40 = vpack.c.bf16 %v323_v35, %v320_v33  ;;  %v1139_v41 = vpack.c.bf16 %v325_v37, %v322_v36  ;;  %v329_v44 = vld [vmem:[#allocation7 + $0xa8] sm:$0xff]  ;;  %v151_v27 = vshrl.u32 %v150_v26, 7 }
  0x72   :  { %v326_v42 = vld [vmem:[#allocation7 + $0x90] sm:$0xff]  ;;  %v1112_v43 = vpack.c.bf16 %v330_v39, %v327_v38  ;;  %v328_v45 = vld [vmem:[#allocation7 + $0xa0] sm:$0xff]  ;;  %v331_v46 = vld [vmem:[#allocation7 + $0xb8] sm:$0xff] }
  0x73   :  { %1067 = vmatpush1.bf16.msra.mxu0 %v1066_v56  ;;  %1093 = vmatpush3.bf16.msra.mxu1 %v1092_v57  ;;  %v333_v47 = vld [vmem:[#allocation7 + $0xc8] sm:$0xff]  ;;  %v336_v48 = vld [vmem:[#allocation7 + $0xe0] sm:$0xff]  ;;  %v1114_v49 = vpack.c.bf16 %v329_v44, %v326_v42  ;;  %v1142_v50 = vpack.c.bf16 %v331_v46, %v328_v45  ;;  %v335_v53 = vld [vmem:[#allocation7 + $0xd8] sm:$0xff]  ;;  %v1544_v28 = vsub.s32 0, %v151_v27  ;;  %v1549_v30 = vsub.s32 1, %v151_v27 }
  0x74   :  { %1069 = vmatprep.subr.bf16.mxu0 %v1068_v59  ;;  %1094 = vmatprep.subr.bf16.mxu1 %v1398_v0  ;;  %v332_v51 = vld [vmem:[#allocation7 + $0xc0] sm:$0xff]  ;;  %v1116_v52 = vpack.c.bf16 %v336_v48, %v333_v47  ;;  %v334_v54 = vld [vmem:[#allocation7 + $0xd0] sm:$0xff]  ;;  %v337_v55 = vld [vmem:[#allocation7 + $0xe8] sm:$0xff] }
  0x75   :  { %v339_v56 = vld [vmem:[#allocation7 + $0xf8] sm:$0xff]  ;;  %v342_v57 = vld [vmem:[#allocation7 + $0x110] sm:$0xff]  ;;  %v1118_v58 = vpack.c.bf16 %v335_v53, %v332_v51  ;;  %v1145_v59 = vpack.c.bf16 %v337_v55, %v334_v54  ;;  %v341_v62 = vld [vmem:[#allocation7 + $0x108] sm:$0xff] }
  0x76   :  { %v338_v60 = vld [vmem:[#allocation7 + $0xf0] sm:$0xff]  ;;  %v1120_v61 = vpack.c.bf16 %v342_v57, %v339_v56  ;;  %v340_v63 = vld [vmem:[#allocation7 + $0x100] sm:$0xff]  ;;  %v343_v2 = vld [vmem:[#allocation7 + $0x118] sm:$0xff] }
  0x77   :  { %1071 = vmatpush1.bf16.msra.mxu0 %v1070_v3  ;;  %1096 = vmatpush3.bf16.msra.mxu1 %v1095_v4  ;;  %v1122_v3 = vpack.c.bf16 %v341_v62, %v338_v60  ;;  %v1148_v4 = vpack.c.bf16 %v343_v2, %v340_v63  ;;  %v345_v5 = vld [vmem:[#allocation7 + $0x128] sm:$0xff]  ;;  %v344_v8 = vld [vmem:[#allocation7 + $0x120] sm:$0xff]  ;;  %v347_v9 = vld [vmem:[#allocation7 + $0x138] sm:$0xff] }
  0x78   :  { %1073 = vmatprep.subr.bf16.mxu0 %v1072_v6  ;;  %1097 = vmatprep.subr.bf16.mxu1 %v1398_v0  ;;  %v348_v6 = vld [vmem:[#allocation7 + $0x140] sm:$0xff]  ;;  %v346_v10 = vld [vmem:[#allocation7 + $0x130] sm:$0xff]  ;;  %v1126_v11 = vpack.c.bf16 %v347_v9, %v344_v8  ;;  %v351_v14 = vld [vmem:[#allocation7 + $0x158] sm:$0xff] }
  0x79   :  { %v1124_v7 = vpack.c.bf16 %v348_v6, %v345_v5  ;;  %v350_v17 = vld [vmem:[#allocation7 + $0x150] sm:$0xff]  ;;  %v353_v18 = vld [vmem:[#allocation7 + $0x168] sm:$0xff]  ;;  %v352_v19 = vld [vmem:[#allocation7 + $0x160] sm:$0xff] }
  0x7a   :  { %v1130_v20 = vpack.c.bf16 %v353_v18, %v350_v17  ;;  %v520_v24 = vld [vmem:[#allocation8 + $0x20] sm:$0xff]  ;;  %v148_v29 = vld [vmem:[%s1605_s2] sm:$0x7]  ;;  %v518_v44 = vld [vmem:[#allocation8 + $0x10] sm:$0xff] }
  0x7b   :  { %1075 = vmatpush1.bf16.msra.mxu0 %v1074_v12  ;;  %1099 = vmatpush3.bf16.msra.mxu1 %v1098_v13  ;;  %v349_v12 = vld [vmem:[#allocation7 + $0x148] sm:$0xff]  ;;  %v157_v33 = vrot.slane %v148_v29, %v1549_v30  ;;  %v523_v46 = vld [vmem:[#allocation8 + $0x38] sm:$0xff]  ;;  %v526_v47 = vld [vmem:[#allocation8 + $0x50] sm:$0xff] }
  0x7c   :  { %1101 = vmatprep.subr.bf16.mxu0 %v1100_v15  ;;  %1132 = vmatprep.subr.bf16.mxu1 %v1398_v0  ;;  %v1151_v13 = vpack.c.bf16 %v349_v12, %v346_v10  ;;  %v354_v15 = vld [vmem:[#allocation7 + $0x170] sm:$0xff]  ;;  %v521_v45 = vld [vmem:[#allocation8 + $0x28] sm:$0xff]  ;;  %v1160_v53 = vpack.c.bf16 %v526_v47, %v523_v46  ;;  %v524_v55 = vld [vmem:[#allocation8 + $0x40] sm:$0xff] }
  0x7d   :  { %v1128_v16 = vpack.c.bf16 %v354_v15, %v351_v14  ;;  %v522_v51 = vld [vmem:[#allocation8 + $0x30] sm:$0xff]  ;;  %v525_v54 = vld [vmem:[#allocation8 + $0x48] sm:$0xff]  ;;  %v527_v56 = vld [vmem:[#allocation8 + $0x58] sm:$0xff] }
  0x7e   :  { %230 = vmatmul.mubr.f32.vlgmr.msra.gmra.mrb[0].mxu0 %v99_v21  ;;  %937 = vmatmul.mubr.f32.vlgmr.msra.gmra.mrb[0].mxu1 %v99_v21  ;;  %v355_v21 = vld [vmem:[#allocation7 + $0x178] sm:$0xff]  ;;  %v529_v57 = vld [vmem:[#allocation8 + $0x68] sm:$0xff]  ;;  %v1192_v60 = vpack.c.bf16 %v527_v56, %v524_v55  ;;  %v530_v2 = vld [vmem:[#allocation8 + $0x70] sm:$0xff] }
  0x7f   :  { %1103 = vmatpush1.bf16.msra.mxu0 %v1102_v22  ;;  %1134 = vmatpush3.bf16.msra.mxu1 %v1133_v23  ;;  %v1154_v22 = vpack.c.bf16 %v355_v21, %v352_v19  ;;  %v517_v23 = vld [vmem:[#allocation8 + $0x8] sm:$0xff]  ;;  %v531_v63 = vld [vmem:[#allocation8 + $0x78] sm:$0xff]  ;;  %v538_v5 = vld [vmem:[#allocation8 + $0xb0] sm:$0xff] }
  0x80   :  { %1105 = vmatprep.subr.bf16.mxu0 %v1104_v25  ;;  %1135 = vmatprep.subr.bf16.mxu1 %v1398_v0  ;;  %v1156_v25 = vpack.c.bf16 %v520_v24, %v517_v23  ;;  %v534_v8 = vld [vmem:[#allocation8 + $0x90] sm:$0xff]  ;;  %v537_v10 = vld [vmem:[#allocation8 + $0xa8] sm:$0xff]  ;;  %v539_v12 = vld [vmem:[#allocation8 + $0xb8] sm:$0xff] }
  0x81   :  { %437 = vmatprep.mubr.f32.mxu0 %v1399_v1  ;;  %971 = vmatprep.mubr.msk.f32.mxu1 %vm1400_vm0, %v1399_v1  ;;  %v544_v14 = vld [vmem:[#allocation8 + $0xe0] sm:$0xff]  ;;  %v1170_v15 = vpack.c.bf16 %v537_v10, %v534_v8  ;;  %v543_v19 = vld [vmem:[#allocation8 + $0xd8] sm:$0xff]  ;;  %v545_v21 = vld [vmem:[#allocation8 + $0xe8] sm:$0xff] }
  0x82   :  { %v540_v17 = vld [vmem:[#allocation8 + $0xc0] sm:$0xff]  ;;  %v550_v23 = vld [vmem:[#allocation8 + $0x110] sm:$0xff] }
  0x83   :  { %1107 = vmatpush1.bf16.msra.mxu0 %v1106_v31  ;;  %1137 = vmatpush3.bf16.msra.mxu1 %v1136_v32  ;;  %v1551_v31 = vsub.s32 2, %v151_v27  ;;  %v153_v32 = vrot.slane %v148_v29, %v1544_v28  ;;  %v1174_v24 = vpack.c.bf16 %v543_v19, %v540_v17  ;;  %v546_v26 = vld [vmem:[#allocation8 + $0xf0] sm:$0xff]  ;;  %v732_v17 = vld [vmem:[#allocation10 + $0x40] sm:$0xff] }
  0x84   :  { %1109 = vmatprep.subr.bf16.mxu0 %v1108_v34  ;;  %1138 = vmatprep.subr.bf16.mxu1 %v1398_v0  ;;  %v562_v46 = vld [vmem:[#allocation8 + $0x170] sm:$0xff] }
  0x85   :  { %v161_v34 = vrot.slane %v148_v29, %v1551_v31  ;;  %v549_v29 = vld [vmem:[#allocation8 + $0x108] sm:$0xff]  ;;  %v726_v8 = vld [vmem:[#allocation10 + $0x10] sm:$0xff] }
  0x87   :  { %1111 = vmatpush1.bf16.msra.mxu0 %v1110_v40  ;;  %1140 = vmatpush3.bf16.msra.mxu1 %v1139_v41  ;;  %v516_v40 = vld [vmem:[#allocation8] sm:$0xff] }
  0x88   :  { %1113 = vmatprep.subr.bf16.mxu0 %v1112_v43  ;;  %1141 = vmatprep.subr.bf16.mxu1 %v1398_v0  ;;  %v519_v43 = vld [vmem:[#allocation8 + $0x18] sm:$0xff] }
  0x8b   :  { %1115 = vmatpush1.bf16.msra.mxu0 %v1114_v49  ;;  %1143 = vmatpush3.bf16.msra.mxu1 %v1142_v50  ;;  %v1158_v49 = vpack.c.bf16 %v519_v43, %v516_v40  ;;  %v1189_v50 = vpack.c.bf16 %v521_v45, %v518_v44  ;;  %v555_v40 = vld [vmem:[#allocation8 + $0x138] sm:$0xff]  ;;  %v557_v43 = vld [vmem:[#allocation8 + $0x148] sm:$0xff] }
  0x8c   :  { %1117 = vmatprep.subr.bf16.mxu0 %v1116_v52  ;;  %1144 = vmatprep.subr.bf16.mxu1 %v1398_v0  ;;  %v559_v45 = vld [vmem:[#allocation8 + $0x158] sm:$0xff] }
  0x8d   :  { %v1184_v47 = vpack.c.bf16 %v562_v46, %v559_v45 }
  0x8f   :  { %1119 = vmatpush1.bf16.msra.mxu0 %v1118_v58  ;;  %1146 = vmatpush3.bf16.msra.mxu1 %v1145_v59  ;;  %v532_v58 = vld [vmem:[#allocation8 + $0x80] sm:$0xff]  ;;  %v1162_v59 = vpack.c.bf16 %v525_v54, %v522_v51  ;;  %v356_v54 = vld [vmem:[%s1607_s4] sm:$0x7] }
  0x90   :  { %1121 = vmatprep.subr.bf16.mxu0 %v1120_v61  ;;  %1147 = vmatprep.subr.bf16.mxu1 %v1398_v0  ;;  %v528_v61 = vld [vmem:[#allocation8 + $0x60] sm:$0xff]  ;;  %v1164_v62 = vpack.c.bf16 %v532_v58, %v529_v57  ;;  %v361_v55 = vrot.slane %v356_v54, %v1544_v28  ;;  %v365_v56 = vrot.slane %v356_v54, %v1549_v30 }
  0x91   :  { %v1166_v6 = vpack.c.bf16 %v531_v63, %v528_v61  ;;  %v369_v58 = vrot.slane %v356_v54, %v1551_v31 }
  0x93   :  { %1123 = vmatpush1.bf16.msra.mxu0 %v1122_v3  ;;  %1149 = vmatpush3.bf16.msra.mxu1 %v1148_v4  ;;  %v533_v3 = vld [vmem:[#allocation8 + $0x88] sm:$0xff]  ;;  %v535_v4 = vld [vmem:[#allocation8 + $0x98] sm:$0xff] }
  0x94   :  { %1150 = vmatprep.subr.bf16.mxu1 %v1398_v0  ;;  %1125 = vmatprep.subr.bf16.mxu0 %v1124_v7  ;;  %v1195_v7 = vpack.c.bf16 %v533_v3, %v530_v2  ;;  %v1168_v9 = vpack.c.bf16 %v538_v5, %v535_v4  ;;  %v724_v2 = vld [vmem:[#allocation10] sm:$0xff]  ;;  %v725_v3 = vld [vmem:[#allocation10 + $0x8] sm:$0xff] }
  0x97   :  { %1127 = vmatpush1.bf16.msra.mxu0 %v1126_v11  ;;  %1152 = vmatpush3.bf16.msra.mxu1 %v1151_v13  ;;  %v536_v11 = vld [vmem:[#allocation8 + $0xa0] sm:$0xff]  ;;  %v541_v13 = vld [vmem:[#allocation8 + $0xc8] sm:$0xff] }
  0x98   :  { %1153 = vmatprep.subr.bf16.mxu1 %v1398_v0  ;;  %1129 = vmatprep.subr.bf16.mxu0 %v1128_v16  ;;  %v1198_v16 = vpack.c.bf16 %v539_v12, %v536_v11  ;;  %v1172_v18 = vpack.c.bf16 %v544_v14, %v541_v13  ;;  %v728_v11 = vld [vmem:[#allocation10 + $0x20] sm:$0xff]  ;;  %v729_v12 = vld [vmem:[#allocation10 + $0x28] sm:$0xff]  ;;  %v730_v14 = vld [vmem:[#allocation10 + $0x30] sm:$0xff] }
  0x99   :  { %v1219_v13 = vpack.c.bf16 %v729_v12, %v728_v11 }
  0x9b   :  { %1131 = vmatpush1.bf16.msra.mxu0 %v1130_v20  ;;  %1155 = vmatpush3.bf16.msra.mxu1 %v1154_v22  ;;  %v542_v20 = vld [vmem:[#allocation8 + $0xd0] sm:$0xff]  ;;  %v547_v22 = vld [vmem:[#allocation8 + $0xf8] sm:$0xff] }
  0x9c   :  { %1188 = vmatprep.subr.bf16.mxu1 %v1398_v0  ;;  %1157 = vmatprep.subr.bf16.mxu0 %v1156_v25  ;;  %v1201_v25 = vpack.c.bf16 %v545_v21, %v542_v20  ;;  %v1176_v27 = vpack.c.bf16 %v550_v23, %v547_v22  ;;  %v735_v20 = vld [vmem:[#allocation10 + $0x58] sm:$0xff]  ;;  %v736_v22 = vld [vmem:[#allocation10 + $0x60] sm:$0xff]  ;;  %v737_v23 = vld [vmem:[#allocation10 + $0x68] sm:$0xff] }
 0x151   :  { %v231_v35 = vpop.f32.mrb[0].mxu0  ;;  %v302_v36 = vpop.f32.mrb[0].mxu1 }
 0x152   :  { %v232_v37 = vadd.f32 %v231_v35, %v153_v32  ;;  %v233_v38 = vpop.f32.mrb[1].mxu0  ;;  %v938_v39 = vpop.f32.mrb[1].mxu1  ;;  %v303_v42 = vadd.f32 %v302_v36, %v161_v34  ;;  %v548_v32 = vld [vmem:[#allocation8 + $0x100] sm:$0xff]  ;;  %v1178_v34 = vpack.c.bf16 %v549_v29, %v546_v26  ;;  %v553_v36 = vld [vmem:[#allocation8 + $0x128] sm:$0xff]  ;;  %v739_v26 = vld [vmem:[#allocation10 + $0x78] sm:$0xff] }
 0x153   :  { %v234_v41 = vadd.f32 %v233_v38, %v157_v33  ;;  %v551_v33 = vld [vmem:[#allocation8 + $0x118] sm:$0xff]  ;;  %v552_v39 = vld [vmem:[#allocation8 + $0x120] sm:$0xff] }
 0x154   :  { %v1204_v35 = vpack.c.bf16 %v551_v33, %v548_v32  ;;  %v564_v29 = vld [vmem:[%s1609_s6] sm:$0x7]  ;;  %s1401_s6 = smov [#allocation11]  }
 0x155   :  { %v306_v48 = vmax.f32 %v232_v37, %v234_v41  ;;  %v556_v37 = vld [vmem:[#allocation8 + $0x140] sm:$0xff]  ;;  %v554_v41 = vld [vmem:[#allocation8 + $0x130] sm:$0xff]  ;;  %v569_v32 = vrot.slane %v564_v29, %v1544_v28  ;;  %v573_v33 = vrot.slane %v564_v29, %v1549_v30  ;;  %s824_s13 = sshll.u32 %s1401_s6, 4  ;;  %s825_s13 = int_to_ptr.vmem [resolvable:$true] %s824_s13 }
 0x156   :  { %v1180_v38 = vpack.c.bf16 %v556_v37, %v553_v36  ;;  %v1207_v44 = vpack.c.bf16 %v557_v43, %v554_v41  ;;  %v835_v43 = vld [vmem:[%s1611_s8] ss:$0 sm:$0xff]  ;;  %s1359_s1 = scalar_lea.vmem %s825_s13, 128  ;;  %p1364_p13 = scmp.lt.s32.totalorder %s825_s13, %s825_s13 }
 0x157   :  { %v307_v52 = vmax.f32 %v306_v48, %v303_v42  ;;  %v1182_v42 = vpack.c.bf16 %v555_v40, %v552_v39  ;;  %v558_v48 = vld [vmem:[#allocation8 + $0x150] sm:$0xff]  ;;  %p1360_p12 = scmp.ne.s32.totalorder %s825_s13, %s1359_s1  ;;  %p1365_p0 = scmp.lt.s32.totalorder %s1359_s1, %s1359_s1 }
 0x159   :  { %438 = vmatmul.mubr.f32.vlgmr.msra.gmra.mrb[2].mxu0 %v307_v52  ;;  %972 = vmatmul.mubr.f32.vlgmr.msra.gmra.mrb[2].mxu1 %v307_v52  ;;  %v563_v52 = vld [vmem:[#allocation8 + $0x178] sm:$0xff]  ;;  %p1366_p1 = por %p1365_p0, %p1364_p13 }
 0x15a   :  { %1159 = vmatpush1.bf16.msra.mxu0 %v1158_v49  ;;  %1190 = vmatpush3.bf16.msra.mxu1 %v1189_v50  ;;  %v561_v49 = vld [vmem:[#allocation8 + $0x168] sm:$0xff]  ;;  %v560_v50 = vld [vmem:[#allocation8 + $0x160] sm:$0xff] }
 0x15b   :  { %1161 = vmatprep.subr.bf16.mxu0 %v1160_v53  ;;  %1191 = vmatprep.subr.bf16.mxu1 %v1398_v0  ;;  %v1186_v51 = vpack.c.bf16 %v561_v49, %v558_v48  ;;  %v1210_v53 = vpack.c.bf16 %v563_v52, %v560_v50  ;;  %p1367_p2 = pnand %p1366_p1, %p1360_p12 }
 0x15c   :  { %645 = vmatprep.mubr.f32.mxu0 %v1399_v1  ;;  %1006 = vmatprep.mubr.msk.f32.mxu1 %vm1400_vm0, %v1399_v1 }
 0x15e   :  { %1163 = vmatpush1.bf16.msra.mxu0 %v1162_v59  ;;  %1193 = vmatpush3.bf16.msra.mxu1 %v1192_v60 }
 0x15f   :  { %1165 = vmatprep.subr.bf16.mxu0 %v1164_v62  ;;  %1194 = vmatprep.subr.bf16.mxu1 %v1398_v0 }
 0x162   :  { %1167 = vmatpush1.bf16.msra.mxu0 %v1166_v6  ;;  %1196 = vmatpush3.bf16.msra.mxu1 %v1195_v7  ;;  %v1213_v6 = vpack.c.bf16 %v725_v3, %v724_v2 }
 0x163   :  { %1169 = vmatprep.subr.bf16.mxu0 %v1168_v9  ;;  %1197 = vmatprep.subr.bf16.mxu1 %v1398_v0  ;;  %v727_v9 = vld [vmem:[#allocation10 + $0x18] sm:$0xff] }
 0x164   :  { %v1216_v10 = vpack.c.bf16 %v727_v9, %v726_v8 }
 0x166   :  { %1171 = vmatpush1.bf16.msra.mxu0 %v1170_v15  ;;  %1199 = vmatpush3.bf16.msra.mxu1 %v1198_v16  ;;  %v731_v15 = vld [vmem:[#allocation10 + $0x38] sm:$0xff] }
 0x167   :  { %1173 = vmatprep.subr.bf16.mxu0 %v1172_v18  ;;  %1200 = vmatprep.subr.bf16.mxu1 %v1398_v0  ;;  %v1222_v16 = vpack.c.bf16 %v731_v15, %v730_v14  ;;  %v733_v18 = vld [vmem:[#allocation10 + $0x48] sm:$0xff] }
 0x168   :  { %v1225_v19 = vpack.c.bf16 %v733_v18, %v732_v17 }
 0x16a   :  { %1175 = vmatpush1.bf16.msra.mxu0 %v1174_v24  ;;  %1202 = vmatpush3.bf16.msra.mxu1 %v1201_v25  ;;  %v1231_v24 = vpack.c.bf16 %v737_v23, %v736_v22  ;;  %v738_v25 = vld [vmem:[#allocation10 + $0x70] sm:$0xff] }
 0x16b   :  { %1177 = vmatprep.subr.bf16.mxu0 %v1176_v27  ;;  %1203 = vmatprep.subr.bf16.mxu1 %v1398_v0  ;;  %v1234_v27 = vpack.c.bf16 %v739_v26, %v738_v25 }
 0x16e   :  { %1179 = vmatpush1.bf16.msra.mxu0 %v1178_v34  ;;  %1205 = vmatpush3.bf16.msra.mxu1 %v1204_v35  ;;  %v577_v35 = vrot.slane %v564_v29, %v1551_v31 }
 0x16f   :  { %1206 = vmatprep.subr.bf16.mxu1 %v1398_v0  ;;  %1181 = vmatprep.subr.bf16.mxu0 %v1180_v38 }
 0x172   :  { %1183 = vmatpush1.bf16.msra.mxu0 %v1182_v42  ;;  %1208 = vmatpush3.bf16.msra.mxu1 %v1207_v44 }
 0x173   :  { %1209 = vmatprep.subr.bf16.mxu1 %v1398_v0  ;;  %1185 = vmatprep.subr.bf16.mxu0 %v1184_v47 }
 0x176   :  { %1187 = vmatpush1.bf16.msra.mxu0 %v1186_v51  ;;  %1211 = vmatpush3.bf16.msra.mxu1 %v1210_v53 }
 0x177   :  { %1212 = vmatprep.subr.bf16.mxu0 %v1398_v0 }
 0x22c   :  { %v439_v57 = vpop.f32.mrb[2].mxu0  ;;  %v510_v59 = vpop.f32.mrb[2].mxu1 }
 0x22d   :  { %v440_v60 = vadd.f32 %v439_v57, %v361_v55  ;;  %v441_v61 = vpop.f32.mrb[3].mxu0  ;;  %v973_v62 = vpop.f32.mrb[3].mxu1  ;;  %v511_v4 = vadd.f32 %v510_v59, %v369_v58 }
 0x22e   :  { %v442_v63 = vadd.f32 %v441_v61, %v365_v56 }
 0x230   :  { %v514_v5 = vmax.f32 %v440_v60, %v442_v63 }
 0x232   :  { %v515_v7 = vmax.f32 %v514_v5, %v511_v4 }
 0x234   :  { %646 = vmatmul.mubr.f32.vlgmr.msra.gmra.mrb[4].mxu0 %v515_v7  ;;  %1007 = vmatmul.mubr.f32.vlgmr.msra.gmra.mrb[4].mxu1 %v515_v7 }
 0x235   :  { %1214 = vmatpush3.bf16.msra.mxu0 %v1213_v6  ;;  %1041 = vmatprep.mubr.msk.f32.mxu0 %vm1400_vm0, %v1399_v1  ;;  %v734_v1 = vld [vmem:[#allocation10 + $0x50] sm:$0xff] }
 0x236   :  { %1215 = vmatprep.subr.bf16.mxu0 %v1398_v0  ;;  %v1228_v21 = vpack.c.bf16 %v735_v20, %v734_v1 }
 0x239   :  { %1217 = vmatpush3.bf16.msra.mxu0 %v1216_v10 }
 0x23a   :  { %1218 = vmatprep.subr.bf16.mxu0 %v1398_v0 }
 0x23d   :  { %1220 = vmatpush3.bf16.msra.mxu0 %v1219_v13 }
 0x23e   :  { %1221 = vmatprep.subr.bf16.mxu0 %v1398_v0 }
 0x241   :  { %1223 = vmatpush3.bf16.msra.mxu0 %v1222_v16 }
 0x242   :  { %1224 = vmatprep.subr.bf16.mxu0 %v1398_v0 }
 0x245   :  { %1226 = vmatpush3.bf16.msra.mxu0 %v1225_v19 }
 0x246   :  { %1227 = vmatprep.subr.bf16.mxu0 %v1398_v0 }
 0x249   :  { %1229 = vmatpush3.bf16.msra.mxu0 %v1228_v21 }
 0x24a   :  { %1230 = vmatprep.subr.bf16.mxu0 %v1398_v0 }
 0x24d   :  { %1232 = vmatpush3.bf16.msra.mxu0 %v1231_v24 }
 0x24e   :  { %1233 = vmatprep.subr.bf16.mxu0 %v1398_v0 }
 0x251   :  { %1235 = vmatpush3.bf16.msra.mxu0 %v1234_v27 }
 0x307   :  { %v647_v34 = vpop.f32.mrb[4].mxu0  ;;  %v718_v36 = vpop.f32.mrb[4].mxu1 }
 0x308   :  { %v648_v37 = vadd.f32 %v647_v34, %v569_v32  ;;  %v649_v38 = vpop.f32.mrb[5].mxu0  ;;  %v1008_v39 = vpop.f32.mrb[5].mxu1  ;;  %v719_v40 = vadd.f32 %v718_v36, %v577_v35 }
 0x309   :  { %v650_v0 = vadd.f32 %v649_v38, %v573_v33 }
 0x30b   :  { %v722_v41 = vmax.f32 %v648_v37, %v650_v0 }
 0x30d   :  { %v723_v42 = vmax.f32 %v722_v41, %v719_v40 }
 0x30f   :  { %1042 = vmatmul.mubr.f32.vlgmr.msra.gmra.mrb[6].mxu0 %v723_v42 }
 0x3e2   :  { %v813_v28 = vpop.f32.mrb[6].mxu0 }
 0x3e3   :  { %v814_v30 = vadd.f32 %v835_v43, %v813_v28  ;;  %v1043_v44 = vpop.f32.mrb[7].mxu0 }
 0x3e5   :  { %817 = vst [vmem:[#allocation11] sm:$0xff] %v814_v30 }
 0x3e6   :  { %1370 = shalt.err (!%p1367_p2)
}
 0x3e7   :  { %s1371_s15 = scalar_lea.hbm %s1612_s9, 128 }
 0x3e8   :  { %p1372_p3 = scmp.ne.s32.totalorder %s1612_s9, %s1371_s15  ;;  %p1375_p4 = scmp.lt.u32.totalorder %s1371_s15, %s1612_s9 }
 0x3ea   :  { %p1377_p5 = pnand %p1375_p4, %p1372_p3 }
 0x3ec   :  { %1380 = shalt.err (!%p1377_p5)
}
 0x3ed   :  { %827 = dma.vmem_to_hbm [thread:$0]  %s825_s13, 128, %s1612_s9, [#allocation4]  }
 0x3ee   :  { %1387 = dma.done.wait [#allocation4], 128  }
 0x3ef   :  { %1388 = vsyncadd [#allocation4], 4294967168 }
 0x3f0   :  { %831 = vsyncpa [#allocation3], 1 }
 0x3f1   :  { %832 = vsyncpa [#allocation6], 1 }
 0x3f2   :  { %833 = vsyncpa [#allocation9], 1 }
 0x3f3   :  { %834 = vsyncpa [#allocation4], 1 }

</bundles_post_ra>
